<compile_context>
chip_gen: v6e
topology: v6e:2x2x1
jax: 0.10.0
libtpu: 0.0.40
codegen_flags: <defaults>
</compile_context>

<pallas_src>
import jax
import jax.numpy as jnp
from jax.experimental import pallas as pl
from jax.experimental.pallas import tpu as pltpu


def _make_kernel(S: int, D: int):
    def kernel(idx_ref, x_ref, emb_ref, o_ref, pe_ref):
        # idx_ref : SMEM (S,)      int32   (scalar prefetch)
        # x_ref   : VMEM (TB, S*D) input tile
        # emb_ref : VMEM (V, D)    full embedding table (resident)
        # o_ref   : VMEM (TB, S*D) output tile
        # pe_ref  : VMEM (1, S*D)  scratch holding the flattened positional row
        #
        # Gather emb[idx[s], :] into the flattened row.  Static unroll over S
        # (S is known at trace time); each step is one dynamic-row read plus a
        # D-lane store at a static lane offset.
        for s in range(S):
            v = idx_ref[s]
            pe_ref[:, pl.ds(s * D, D)] = emb_ref[pl.ds(v, 1), :]

        # Lane-dense broadcast add over the batch tile.
        o_ref[...] = x_ref[...] + pe_ref[...]

    return kernel


def variable_positional_encoding(x, embedding, variable_idx,
                                 *, max_tile_bytes=1 << 20):
    """x: (B, S, D); embedding: (V, D); variable_idx: (S,) int. Returns (B, S, D)."""
    B, S, D = x.shape
    V, D2 = embedding.shape
    assert D2 == D, "embedding d_model must match x"
    assert variable_idx.shape == (S,), "variable_idx must have shape (S,)"

    SD = S * D
    x_flat = x.reshape(B, SD)                       # lane-dense view
    embedding = embedding.astype(x.dtype)
    idx = variable_idx.astype(jnp.int32)

    # Batch-tile size: full batch if it fits the per-tile budget, otherwise a
    # multiple of 8 rows.  Double-buffered x + out tiles stay <= ~4 MiB, well
    # inside scoped VMEM defaults (16 MiB v5e, 32 MiB v6e/v7x).
    row_bytes = SD * x.dtype.itemsize
    if B * row_bytes <= max_tile_bytes:
        TB = B
    else:
        TB = max(8, min(B, (max_tile_bytes // row_bytes) // 8 * 8))
    grid = (pl.cdiv(B, TB),)

    kernel = _make_kernel(S, D)

    out_flat = pl.pallas_call(
        kernel,
        out_shape=jax.ShapeDtypeStruct((B, SD), x.dtype),
        grid_spec=pltpu.PrefetchScalarGridSpec(
            num_scalar_prefetch=1,
            grid=grid,
            in_specs=[
                # x: one batch tile per grid step (lane-dense last dim = S*D)
                pl.BlockSpec((TB, SD), lambda i, idx_ref: (i, 0)),
                # embedding table: full block, same index every step -> resident
                pl.BlockSpec((V, D), lambda i, idx_ref: (0, 0)),
            ],
            out_specs=pl.BlockSpec((TB, SD), lambda i, idx_ref: (i, 0)),
            scratch_shapes=[pltpu.VMEM((1, SD), x.dtype)],
        ),
        compiler_params=pltpu.CompilerParams(
            # Tiles are independent (pe row is recomputed per step), so the
            # batch-tile axis can shard across v7x's two TensorCores.
            dimension_semantics=("parallel",),
        ),
    )(idx, x_flat, embedding)

    return out_flat.reshape(B, S, D)


if __name__ == "__main__":
    B, S, D = 2, 8, 32          # batch, sequence (== #variables), d_model
    V = 16                      # num_variables in the embedding table

    key = jax.random.PRNGKey(0)
    kx, ke, ki = jax.random.split(key, 3)

    x = jax.random.normal(kx, (B, S, D), dtype=jnp.float32)
    # nn.Embedding default init ~ N(0, 1)
    emb = jax.random.normal(ke, (V, D), dtype=jnp.float32)
    variable_idx = jax.random.randint(ki, (S,), 0, V, dtype=jnp.int32)

    out = variable_positional_encoding(x, emb, variable_idx)
    out = jax.block_until_ready(out)

    ref = x + emb[variable_idx][None, :, :]
    assert out.shape == (B, S, D)
    assert jnp.allclose(out, ref, atol=1e-6), "mismatch vs reference"

    print("KERNEL_OK")
</pallas_src>

<mosaic_0001>
module attributes {stable_mosaic.version = 11 : i64} {
  func.func @kernel(%arg0: i32, %arg1: memref<8xi32, #tpu.memory_space<smem>>, %arg2: memref<2x256xf32, #tpu.memory_space<vmem>>, %arg3: memref<16x32xf32, #tpu.memory_space<vmem>>, %arg4: memref<2x256xf32, #tpu.memory_space<vmem>>, %arg5: memref<1x256xf32, #tpu.memory_space<vmem>>) attributes {dimension_semantics = [#tpu.dimension_semantics<parallel>], iteration_bounds = array<i64: 1>, scalar_prefetch = 1 : i64, scratch_operands = 1 : i64, tpu.core_type = #tpu.core_type<tc>, window_params = [{transform_indices = @transform_0, window_bounds = array<i64: 2, 256>}, {pipeline_mode = #tpu.pipeline_mode<synchronous>, transform_indices = @transform_1, window_bounds = array<i64: 16, 32>}, {transform_indices = @transform_2, window_bounds = array<i64: 2, 256>}]} {
    %c0 = arith.constant 0 : index
    %0 = memref.load %arg1[%c0] : memref<8xi32, #tpu.memory_space<smem>>
    %1 = arith.index_cast %0 : i32 to index
    %c0_0 = arith.constant 0 : index
    %2 = vector.load %arg3[%1, %c0_0] : memref<16x32xf32, #tpu.memory_space<vmem>>, vector<1x32xf32>
    %c0_1 = arith.constant 0 : index
    %c0_2 = arith.constant 0 : index
    %3 = vector.load %arg5[%c0_1, %c0_2] : memref<1x256xf32, #tpu.memory_space<vmem>>, vector<1x32xf32>
    tpu.vector_store %arg5[%c0_1, %c0_2], %2 {strides = array<i32>} : memref<1x256xf32, #tpu.memory_space<vmem>>, vector<1x32xf32>,
    %c1 = arith.constant 1 : index
    %4 = memref.load %arg1[%c1] : memref<8xi32, #tpu.memory_space<smem>>
    %5 = arith.index_cast %4 : i32 to index
    %c0_3 = arith.constant 0 : index
    %6 = vector.load %arg3[%5, %c0_3] : memref<16x32xf32, #tpu.memory_space<vmem>>, vector<1x32xf32>
    %c0_4 = arith.constant 0 : index
    %c32 = arith.constant 32 : index
    %7 = vector.load %arg5[%c0_4, %c32] : memref<1x256xf32, #tpu.memory_space<vmem>>, vector<1x32xf32>
    tpu.vector_store %arg5[%c0_4, %c32], %6 {strides = array<i32>} : memref<1x256xf32, #tpu.memory_space<vmem>>, vector<1x32xf32>,
    %c2 = arith.constant 2 : index
    %8 = memref.load %arg1[%c2] : memref<8xi32, #tpu.memory_space<smem>>
    %9 = arith.index_cast %8 : i32 to index
    %c0_5 = arith.constant 0 : index
    %10 = vector.load %arg3[%9, %c0_5] : memref<16x32xf32, #tpu.memory_space<vmem>>, vector<1x32xf32>
    %c0_6 = arith.constant 0 : index
    %c64 = arith.constant 64 : index
    %11 = vector.load %arg5[%c0_6, %c64] : memref<1x256xf32, #tpu.memory_space<vmem>>, vector<1x32xf32>
    tpu.vector_store %arg5[%c0_6, %c64], %10 {strides = array<i32>} : memref<1x256xf32, #tpu.memory_space<vmem>>, vector<1x32xf32>,
    %c3 = arith.constant 3 : index
    %12 = memref.load %arg1[%c3] : memref<8xi32, #tpu.memory_space<smem>>
    %13 = arith.index_cast %12 : i32 to index
    %c0_7 = arith.constant 0 : index
    %14 = vector.load %arg3[%13, %c0_7] : memref<16x32xf32, #tpu.memory_space<vmem>>, vector<1x32xf32>
    %c0_8 = arith.constant 0 : index
    %c96 = arith.constant 96 : index
    %15 = vector.load %arg5[%c0_8, %c96] : memref<1x256xf32, #tpu.memory_space<vmem>>, vector<1x32xf32>
    tpu.vector_store %arg5[%c0_8, %c96], %14 {strides = array<i32>} : memref<1x256xf32, #tpu.memory_space<vmem>>, vector<1x32xf32>,
    %c4 = arith.constant 4 : index
    %16 = memref.load %arg1[%c4] : memref<8xi32, #tpu.memory_space<smem>>
    %17 = arith.index_cast %16 : i32 to index
    %c0_9 = arith.constant 0 : index
    %18 = vector.load %arg3[%17, %c0_9] : memref<16x32xf32, #tpu.memory_space<vmem>>, vector<1x32xf32>
    %c0_10 = arith.constant 0 : index
    %c128 = arith.constant 128 : index
    %19 = vector.load %arg5[%c0_10, %c128] : memref<1x256xf32, #tpu.memory_space<vmem>>, vector<1x32xf32>
    tpu.vector_store %arg5[%c0_10, %c128], %18 {strides = array<i32>} : memref<1x256xf32, #tpu.memory_space<vmem>>, vector<1x32xf32>,
    %c5 = arith.constant 5 : index
    %20 = memref.load %arg1[%c5] : memref<8xi32, #tpu.memory_space<smem>>
    %21 = arith.index_cast %20 : i32 to index
    %c0_11 = arith.constant 0 : index
    %22 = vector.load %arg3[%21, %c0_11] : memref<16x32xf32, #tpu.memory_space<vmem>>, vector<1x32xf32>
    %c0_12 = arith.constant 0 : index
    %c160 = arith.constant 160 : index
    %23 = vector.load %arg5[%c0_12, %c160] : memref<1x256xf32, #tpu.memory_space<vmem>>, vector<1x32xf32>
    tpu.vector_store %arg5[%c0_12, %c160], %22 {strides = array<i32>} : memref<1x256xf32, #tpu.memory_space<vmem>>, vector<1x32xf32>,
    %c6 = arith.constant 6 : index
    %24 = memref.load %arg1[%c6] : memref<8xi32, #tpu.memory_space<smem>>
    %25 = arith.index_cast %24 : i32 to index
    %c0_13 = arith.constant 0 : index
    %26 = vector.load %arg3[%25, %c0_13] : memref<16x32xf32, #tpu.memory_space<vmem>>, vector<1x32xf32>
    %c0_14 = arith.constant 0 : index
    %c192 = arith.constant 192 : index
    %27 = vector.load %arg5[%c0_14, %c192] : memref<1x256xf32, #tpu.memory_space<vmem>>, vector<1x32xf32>
    tpu.vector_store %arg5[%c0_14, %c192], %26 {strides = array<i32>} : memref<1x256xf32, #tpu.memory_space<vmem>>, vector<1x32xf32>,
    %c7 = arith.constant 7 : index
    %28 = memref.load %arg1[%c7] : memref<8xi32, #tpu.memory_space<smem>>
    %29 = arith.index_cast %28 : i32 to index
    %c0_15 = arith.constant 0 : index
    %30 = vector.load %arg3[%29, %c0_15] : memref<16x32xf32, #tpu.memory_space<vmem>>, vector<1x32xf32>
    %c0_16 = arith.constant 0 : index
    %c224 = arith.constant 224 : index
    %31 = vector.load %arg5[%c0_16, %c224] : memref<1x256xf32, #tpu.memory_space<vmem>>, vector<1x32xf32>
    tpu.vector_store %arg5[%c0_16, %c224], %30 {strides = array<i32>} : memref<1x256xf32, #tpu.memory_space<vmem>>, vector<1x32xf32>,
    %c0_17 = arith.constant 0 : index
    %c0_18 = arith.constant 0 : index
    %32 = vector.load %arg2[%c0_17, %c0_18] : memref<2x256xf32, #tpu.memory_space<vmem>>, vector<2x256xf32>
    %c0_19 = arith.constant 0 : index
    %c0_20 = arith.constant 0 : index
    %33 = vector.load %arg5[%c0_19, %c0_20] : memref<1x256xf32, #tpu.memory_space<vmem>>, vector<1x256xf32>
    %34 = vector.broadcast %33 : vector<1x256xf32> to vector<2x256xf32>
    %35 = arith.addf %32, %34 : vector<2x256xf32>
    %c0_21 = arith.constant 0 : index
    %c0_22 = arith.constant 0 : index
    %36 = vector.load %arg4[%c0_21, %c0_22] : memref<2x256xf32, #tpu.memory_space<vmem>>, vector<2x256xf32>
    tpu.vector_store %arg4[%c0_21, %c0_22], %35 {strides = array<i32>} : memref<2x256xf32, #tpu.memory_space<vmem>>, vector<2x256xf32>,
    return
  }
  func.func @transform_0(%arg0: i32, %arg1: memref<8xi32, #tpu.memory_space<smem>>) -> (i32, i32) {
    %c0_i32 = arith.constant 0 : i32
    %c0_i32_0 = arith.constant 0 : i32
    return %arg0, %c0_i32 : i32, i32
  }
  func.func @transform_1(%arg0: i32, %arg1: memref<8xi32, #tpu.memory_space<smem>>) -> (i32, i32) {
    %c0_i32 = arith.constant 0 : i32
    %c0_i32_0 = arith.constant 0 : i32
    %c0_i32_1 = arith.constant 0 : i32
    return %c0_i32, %c0_i32_0 : i32, i32
  }
  func.func @transform_2(%arg0: i32, %arg1: memref<8xi32, #tpu.memory_space<smem>>) -> (i32, i32) {
    %c0_i32 = arith.constant 0 : i32
    %c0_i32_0 = arith.constant 0 : i32
    return %arg0, %c0_i32 : i32, i32
  }
}

</mosaic_0001>

<bundles_post_ra>
// kernel: tpu_custom_call.1
= control target key start
LH: loop header
LB: loop body
LE: loop exit
PB: predicated region body
PF: predicated region fallthrough
CT: control target
= control target key end

     0   :  { %s342_s12 = smov [#allocation4]   ;;  %s399_s0 = inlined_call_operand.hbm [shape: s32[8], index: 0, kind: input, shape index: {}]   ;;  %s400_s1 = inlined_call_operand.hbm [shape: f32[2,256], index: 1, kind: input, shape index: {}]   ;;  %s401_s2 = inlined_call_operand.hbm [shape: f32[16,32], index: 2, kind: input, shape index: {}]   ;;  %s402_s3 = inlined_call_operand.hbm [shape: f32[2,256], index: 3, kind: output, shape index: {}]  }
   0x1   :  { %9 = dma.hbm_to_smem %s399_s0, 16, %s342_s12, [#allocation3] }
   0x2   :  { %334 = dma.done.wait [#allocation3], 16 }
   0x3   :  { %335 = vsyncadd [#allocation3], 4294967280 }
   0x4   :  { %11 = sfence }
   0x5   :  { %12 = vsyncpa [#allocation6], 0 }
   0x6   :  { %13 = vsyncpa [#allocation9], 0 }
   0x7   :  { %14 = vsyncpa [#allocation7], 0  ;;  %s343_s15 = smov [#allocation5]   ;;  %s344_s17 = smov [#allocation8]  }
   0x8   :  { %s21_s16 = sshll.u32 %s343_s15, 4  ;;  %s30_s18 = sshll.u32 %s344_s17, 4  ;;  %s22_s16 = int_to_ptr.vmem [resolvable:$true] %s21_s16  ;;  %s31_s18 = int_to_ptr.vmem [resolvable:$true] %s30_s18 }
   0x9   :  { %s282_s19 = scalar_lea.vmem %s22_s16, 64  ;;  %p287_p1 = scmp.lt.s32.totalorder %s22_s16, %s22_s16 }
   0xa   :  { %p283_p0 = scmp.ne.s32.totalorder %s22_s16, %s282_s19  ;;  %p288_p2 = scmp.lt.s32.totalorder %s282_s19, %s282_s19 }
   0xc   :  { %p289_p3 = por %p288_p2, %p287_p1 }
   0xe   :  { %p290_p4 = pnand %p289_p3, %p283_p0 }
  0x10   :  { %293 = shalt.err (!%p290_p4)
}
  0x11   :  { %24 = dma.hbm_to_vmem [thread:$0]  %s400_s1, 64, %s22_s16, [#allocation6]  }
  0x12   :  { %s302_s21 = scalar_lea.vmem %s31_s18, 256  ;;  %p307_p6 = scmp.lt.s32.totalorder %s31_s18, %s31_s18 }
  0x13   :  { %p303_p5 = scmp.ne.s32.totalorder %s31_s18, %s302_s21  ;;  %p308_p7 = scmp.lt.s32.totalorder %s302_s21, %s302_s21 }
  0x15   :  { %p309_p8 = por %p308_p7, %p307_p6 }
  0x17   :  { %p310_p9 = pnand %p309_p8, %p303_p5 }
  0x19   :  { %313 = shalt.err (!%p310_p9)
}
  0x1a   :  { %s345_s22 = smov 128   ;;  %s346_s23 = smov 8  }
  0x1b   :  { %36 = dma.hbm_to_vmem [thread:$0]  %s401_s2, 256, %s31_s18, [#allocation9], %s345_s22, %s345_s22, %s346_s23  }
  0x1c   :  { %336 = dma.done.wait [#allocation6], 64  }
  0x1d   :  { %337 = vsyncadd [#allocation6], 4294967232 }
  0x1e   :  { %338 = dma.done.wait [#allocation9], 256  }
  0x1f   :  { %339 = vsyncadd [#allocation9], 4294967040  ;;  %v46_v0 = vlaneseq  ;;  %v347_v1 = vmov 1966171168   ;;  %s244_s1 = sld [smem:[#allocation4 + $0x2]]  ;;  %s348_s7 = smov 64  }
  0x20   :  { %v63_v2 = vunpack.c.l.s4 %v347_v1  ;;  %s242_s26 = sld [smem:[#allocation4 + $0x1]]  ;;  %s349_s9 = smov 32   ;;  %v351_v27 = vmov 1983009808   ;;  %v196_v37 = vld [vmem:[#allocation5] sm:$0xf] }
  0x21   :  { %v382_v3 = vshrl.u32 %v46_v0, 7  ;;  %s251_s27 = sld [smem:[#allocation4 + $0x6]]  ;;  %vm385_vm0 = vcmp.lt.s32.totalorder %v46_v0, 32  ;;  %s350_s14 = smov 96   ;;  %vm72_vm1 = vcmp.ge.s32.totalorder %v46_v0, 32  ;;  %vm73_vm2 = vcmp.lt.s32.totalorder %v46_v0, 64 }
  0x22   :  { %v64_v4 = vunpack.c.0.s8 %v63_v2  ;;  %s249_s28 = sld [smem:[#allocation4 + $0x5]]  ;;  %vm97_vm3 = vcmp.ge.s32.totalorder %v46_v0, 64  ;;  %vm98_vm4 = vcmp.lt.s32.totalorder %v46_v0, 96  ;;  %vm74_vm5 = vmand %vm72_vm1, %vm73_vm2  ;;  %vm122_vm7 = vcmp.ge.s32.totalorder %v46_v0, 96  ;;  %s352_s16 = smov [#allocation10]  }
  0x23   :  { %s253_s29 = sld [smem:[#allocation4 + $0x7]]  ;;  %vm99_vm6 = vmand %vm97_vm3, %vm98_vm4  ;;  %vm123_vm8 = vcmp.lt.s32.totalorder %v46_v0, 128  ;;  %v209_v28 = vunpack.c.l.s4 %v351_v27  ;;  %v201_v29 = vsub.s32 0, %v382_v3  ;;  %v205_v30 = vsub.s32 1, %v382_v3  ;;  %s224_s17 = sshll.u32 %s352_s16, 4  ;;  %s225_s17 = int_to_ptr.vmem [resolvable:$true] %s224_s17 }
  0x24   :  { %v67_v5 = vsub.s32 %v64_v4, %v382_v3  ;;  %s246_s30 = sld [smem:[#allocation4 + $0x3]]  ;;  %vm124_vm9 = vmand %vm122_vm7, %vm123_vm8  ;;  %s314_s18 = scalar_lea.vmem %s225_s17, 64 }
  0x25   :  { %s43_s4 = sld [smem:[#allocation4]]  ;;  %s77_s2 = scalar_lea.vmem [#allocation8], %s244_s1  ;;  %v210_v31 = vunpack.c.0.s8 %v209_v28 }
  0x26   :  { %v245_v6 = vld.sshfl [vmem:[%s77_s2] sm:$0x1 pattern:$0x75316420]  ;;  %s52_s5 = scalar_lea.vmem [#allocation8], %s242_s26  ;;  %s248_s13 = sld [smem:[#allocation4 + $0x4]] }
  0x27   :  { %v93_v7 = vrot.slane %v245_v6, %v67_v5  ;;  %v243_v8 = vld.sshfl [vmem:[%s52_s5] sm:$0x1 pattern:$0x75316420]  ;;  %s153_s6 = scalar_lea.vmem [#allocation8], %s251_s27  ;;  %v213_v35 = vsub.s32 %v210_v31, %v382_v3  ;;  %p315_p10 = scmp.ne.s32.totalorder %s225_s17, %s314_s18 }
  0x28   :  { %v68_v9 = vrot.slane %v243_v8, %v67_v5  ;;  %v252_v10 = vld.sshfl [vmem:[%s153_s6] sm:$0x1 pattern:$0x75316420]  ;;  %s131_s8 = scalar_lea.vmem [#allocation8], %s249_s28  ;;  %p319_p11 = scmp.lt.s32.totalorder %s225_s17, %s225_s17 }
  0x29   :  { %94 = vrot.lane.b32.xlu1 %v93_v7, %s348_s7  ;;  %v169_v11 = vrot.slane %v252_v10, %v67_v5  ;;  %v250_v12 = vld.sshfl [vmem:[%s131_s8] sm:$0x1 pattern:$0x75316420]  ;;  %s175_s10 = scalar_lea.vmem [#allocation8], %s253_s29  ;;  %p320_p12 = scmp.lt.s32.totalorder %s314_s18, %s314_s18 }
  0x2a   :  { %69 = vrot.lane.b32.xlu0 %v68_v9, %s349_s9  ;;  %v147_v13 = vrot.slane %v250_v12, %v67_v5  ;;  %v254_v14 = vld.sshfl [vmem:[%s175_s10] sm:$0x1 pattern:$0x75316420]  ;;  %s102_s11 = scalar_lea.vmem [#allocation8], %s246_s30 }
  0x2b   :  { %v247_v16 = vld.sshfl [vmem:[%s102_s11] sm:$0x1 pattern:$0x75316420]  ;;  %s44_s12 = scalar_lea.vmem [#allocation8], %s43_s4  ;;  %v191_v18 = vrot.slane %v254_v14, %v67_v5  ;;  %p321_p13 = por %p320_p12, %p319_p11 }
  0x2c   :  { %v45_v17 = vld [vmem:[%s44_s12] sm:$0x1]  ;;  %v118_v19 = vrot.slane %v247_v16, %v67_v5  ;;  %s127_s15 = scalar_lea.vmem [#allocation8], %s248_s13 }
  0x2d   :  { %170 = vrot.lane.b32.xlu1 %v169_v11, %s348_s7  ;;  %50 = vst.msk [vmem:[#allocation2] sm:$0x1] %vm385_vm0, %v45_v17  ;;  %v128_v20 = vld [vmem:[%s127_s15] sm:$0x1]  ;;  %p322_p0 = pnand %p321_p13, %p315_p10 }
  0x2e   :  { %148 = vrot.lane.b32.xlu0 %v147_v13, %s349_s9  ;;  %129 = vst.msk [vmem:[#allocation2 + $0x1] sm:$0x1] %vm385_vm0, %v128_v20 }
  0x31   :  { %192 = vrot.lane.b32.xlu1 %v191_v18, %s350_s14 }
  0x32   :  { %119 = vrot.lane.b32.xlu0 %v118_v19, %s350_s14 }
  0x9b   :  { %v95_v21 = vpop.permute.xlu1 %94 }
  0x9c   :  { %v70_v22 = vpop.permute.xlu0 %69 }
  0x9d   :  { %75 = vst.msk [vmem:[#allocation2] sm:$0x1] %vm74_vm5, %v70_v22 }
  0x9e   :  { %100 = vst.msk [vmem:[#allocation2] sm:$0x1] %vm99_vm6, %v95_v21 }
  0x9f   :  { %v171_v23 = vpop.permute.xlu1 %170 }
  0xa0   :  { %v149_v24 = vpop.permute.xlu0 %148 }
  0xa1   :  { %151 = vst.msk [vmem:[#allocation2 + $0x1] sm:$0x1] %vm74_vm5, %v149_v24 }
  0xa2   :  { %173 = vst.msk [vmem:[#allocation2 + $0x1] sm:$0x1] %vm99_vm6, %v171_v23 }
  0xa3   :  { %v193_v25 = vpop.permute.xlu1 %192 }
  0xa4   :  { %195 = vst.msk [vmem:[#allocation2 + $0x1] sm:$0x1] %vm124_vm9, %v193_v25  ;;  %v120_v26 = vpop.permute.xlu0 %119 }
  0xa5   :  { %125 = vst.msk [vmem:[#allocation2] sm:$0x1] %vm124_vm9, %v120_v26 }
  0xac   :  { %v197_v32 = vld [vmem:[#allocation2] sm:$0x3] }
  0xad   :  { %v202_v33 = vrot.slane %v197_v32, %v201_v29  ;;  %v206_v34 = vrot.slane %v197_v32, %v205_v30 }
  0xaf   :  { %v207_v36 = vcombine.low %v202_v33, %v206_v34 }
  0xb1   :  { %v214_v38 = vrot.slane %v207_v36, %v213_v35 }
  0xb3   :  { %v216_v39 = vadd.f32 %v214_v38, %v196_v37 }
  0xb5   :  { %217 = vst [vmem:[#allocation10] sm:$0xf] %v216_v39 }
  0xb6   :  { %325 = shalt.err (!%p322_p0)
}
  0xb7   :  { %227 = dma.vmem_to_hbm [thread:$0]  %s225_s17, 64, %s402_s3, [#allocation7]  }
  0xb8   :  { %340 = dma.done.wait [#allocation7], 64  }
  0xb9   :  { %341 = vsyncadd [#allocation7], 4294967232 }
  0xba   :  { %231 = vsyncpa [#allocation6], 1 }
  0xbb   :  { %232 = vsyncpa [#allocation9], 1 }
  0xbc   :  { %233 = vsyncpa [#allocation7], 1 }

</bundles_post_ra>
